<compile_context>
chip_gen: v5e
topology: v5e:2x2
jax: 0.10.0
libtpu: 0.0.40
codegen_flags: <defaults>
</compile_context>

<pallas_src>
import jax
import jax.numpy as jnp
from jax import lax
from jax.experimental import pallas as pl
from jax.experimental.pallas import tpu as pltpu


def _conv_gemm_kernel(p_ref, w_ref, b_ref, o_ref):
    """Whole (tiny) batch in one invocation; one MXU matmul per image.

    p_ref : (N, K, OH*OW)    im2col patches, lane-dense last dim        VMEM
    w_ref : (Cout, K)        weight.reshape(Cout, -1)                   VMEM
    b_ref : (Cout, 1)        bias column (broadcasts along lanes)       VMEM
    o_ref : (N, Cout, OH*OW) lane-dense output, NCHW-ordered            VMEM
    """
    w = w_ref[...]
    b = b_ref[...]
    for i in range(p_ref.shape[0]):  # static unroll over the small batch
        acc = jnp.dot(w, p_ref[i], preferred_element_type=jnp.float32)
        o_ref[i] = (acc + b).astype(o_ref.dtype)


@jax.jit
def conv2d_pallas(x_nchw, weight_oihw, bias):
    """Conv2d, stride=1, padding=0 (VALID), matching torch.nn.Conv2d.

    x_nchw      : (N, Cin, H, W)
    weight_oihw : (Cout, Cin, KH, KW)   (PyTorch layout)
    bias        : (Cout,)
    returns     : (N, Cout, OH, OW)
    """
    n, cin, h, w = x_nchw.shape
    cout, cin_w, kh, kw = weight_oihw.shape
    assert cin == cin_w
    oh, ow = h - kh + 1, w - kw + 1
    m = oh * ow          # lane axis of the GEMM (196)
    k = cin * kh * kw    # contraction depth (27)

    # --- im2col as a single fused HLO.  Output feature ordering is
    # (cin, kh, kw), exactly matching weight.reshape(Cout, -1). ---
    patches = lax.conv_general_dilated_patches(
        x_nchw, filter_shape=(kh, kw), window_strides=(1, 1), padding="VALID",
        dimension_numbers=("NCHW", "OIHW", "NCHW"),
    ).reshape(n, k, m)                                   # (N, K, OH*OW)

    w2d = weight_oihw.reshape(cout, k)                   # (Cout, K)
    b2d = bias.reshape(cout, 1).astype(jnp.float32)      # (Cout, 1)

    out_flat = pl.pallas_call(
        _conv_gemm_kernel,
        out_shape=jax.ShapeDtypeStruct((n, cout, m), x_nchw.dtype),
        # Single invocation (no grid): full arrays resident in VMEM
        # (<100 KB total, well under even v7x's 64 MiB).
        in_specs=[
            pl.BlockSpec(memory_space=pltpu.MemorySpace.VMEM),
            pl.BlockSpec(memory_space=pltpu.MemorySpace.VMEM),
            pl.BlockSpec(memory_space=pltpu.MemorySpace.VMEM),
        ],
        out_specs=pl.BlockSpec(memory_space=pltpu.MemorySpace.VMEM),
    )(patches, w2d, b2d)

    # (N, Cout, OH*OW) -> (N, Cout, OH, OW): pure reshape, no transpose.
    return out_flat.reshape(n, cout, oh, ow)


if __name__ == "__main__":
    key = jax.random.PRNGKey(0)
    k_x, k_w, k_b = jax.random.split(key, 3)

    # Shapes consistent with the module: Conv2d expects Cin=3, produces Cout=6.
    N, CIN, H, W = 2, 3, 16, 16
    COUT, KH, KW = 6, 3, 3

    x = jax.random.normal(k_x, (N, CIN, H, W), dtype=jnp.float32)

    # Deterministic parameter init mimicking torch's uniform(-bound, bound),
    # bound = 1/sqrt(fan_in), fan_in = CIN*KH*KW.
    fan_in = CIN * KH * KW
    bound = 1.0 / (fan_in ** 0.5)
    weight = jax.random.uniform(k_w, (COUT, CIN, KH, KW), jnp.float32,
                                minval=-bound, maxval=bound)
    bias = jax.random.uniform(k_b, (COUT,), jnp.float32,
                              minval=-bound, maxval=bound)

    out = conv2d_pallas(x, weight, bias)
    out = jax.block_until_ready(out)

    # Sanity check against XLA's conv (reference).
    ref = lax.conv_general_dilated(
        x, weight, window_strides=(1, 1), padding="VALID",
        dimension_numbers=("NCHW", "OIHW", "NCHW")) + bias[None, :, None, None]
    assert out.shape == (N, COUT, H - KH + 1, W - KW + 1)
    assert jnp.allclose(out, ref, atol=1e-4, rtol=1e-4)

    print("KERNEL_OK")
</pallas_src>

<mosaic_0001>
module attributes {stable_mosaic.version = 11 : i64} {
  func.func @_conv_gemm_kernel(%arg0: memref<2x27x196xf32, #tpu.memory_space<vmem>>, %arg1: memref<6x27xf32, #tpu.memory_space<vmem>>, %arg2: memref<6x1xf32, #tpu.memory_space<vmem>>, %arg3: memref<2x6x196xf32, #tpu.memory_space<vmem>>) attributes {dimension_semantics = [], scalar_prefetch = 0 : i64, scratch_operands = 0 : i64, tpu.core_type = #tpu.core_type<tc>} {
    %c0 = arith.constant 0 : index
    %c0_0 = arith.constant 0 : index
    %0 = vector.load %arg1[%c0, %c0_0] : memref<6x27xf32, #tpu.memory_space<vmem>>, vector<6x27xf32>
    %c0_1 = arith.constant 0 : index
    %c0_2 = arith.constant 0 : index
    %1 = vector.load %arg2[%c0_1, %c0_2] : memref<6x1xf32, #tpu.memory_space<vmem>>, vector<6x1xf32>
    %c0_3 = arith.constant 0 : index
    %c0_4 = arith.constant 0 : index
    %c0_5 = arith.constant 0 : index
    %2 = vector.load %arg0[%c0_3, %c0_4, %c0_5] : memref<2x27x196xf32, #tpu.memory_space<vmem>>, vector<1x27x196xf32>
    %3 = vector.shape_cast %2 : vector<1x27x196xf32> to vector<27x196xf32>
    %cst = arith.constant dense<0.000000e+00> : vector<6x196xf32>
    %4 = tpu.matmul %0, %3, %cst {dimension_numbers = #tpu.dot_dimension_numbers<[1], [0], [0], [1], [0, 0, 1, 1], [], []>} : vector<6x27xf32>, vector<27x196xf32>, vector<6x196xf32> -> vector<6x196xf32>
    %5 = vector.broadcast %1 : vector<6x1xf32> to vector<6x196xf32>
    %6 = arith.addf %4, %5 : vector<6x196xf32>
    %c0_6 = arith.constant 0 : index
    %c0_7 = arith.constant 0 : index
    %c0_8 = arith.constant 0 : index
    %7 = vector.load %arg3[%c0_6, %c0_7, %c0_8] : memref<2x6x196xf32, #tpu.memory_space<vmem>>, vector<1x6x196xf32>
    %8 = vector.shape_cast %7 : vector<1x6x196xf32> to vector<6x196xf32>
    %9 = vector.shape_cast %6 : vector<6x196xf32> to vector<1x6x196xf32>
    tpu.vector_store %arg3[%c0_6, %c0_7, %c0_8], %9 {strides = array<i32>} : memref<2x6x196xf32, #tpu.memory_space<vmem>>, vector<1x6x196xf32>,
    %c1 = arith.constant 1 : index
    %c0_9 = arith.constant 0 : index
    %c0_10 = arith.constant 0 : index
    %10 = vector.load %arg0[%c1, %c0_9, %c0_10] : memref<2x27x196xf32, #tpu.memory_space<vmem>>, vector<1x27x196xf32>
    %11 = vector.shape_cast %10 : vector<1x27x196xf32> to vector<27x196xf32>
    %cst_11 = arith.constant dense<0.000000e+00> : vector<6x196xf32>
    %12 = tpu.matmul %0, %11, %cst_11 {dimension_numbers = #tpu.dot_dimension_numbers<[1], [0], [0], [1], [0, 0, 1, 1], [], []>} : vector<6x27xf32>, vector<27x196xf32>, vector<6x196xf32> -> vector<6x196xf32>
    %13 = vector.broadcast %1 : vector<6x1xf32> to vector<6x196xf32>
    %14 = arith.addf %12, %13 : vector<6x196xf32>
    %c1_12 = arith.constant 1 : index
    %c0_13 = arith.constant 0 : index
    %c0_14 = arith.constant 0 : index
    %15 = vector.load %arg3[%c1_12, %c0_13, %c0_14] : memref<2x6x196xf32, #tpu.memory_space<vmem>>, vector<1x6x196xf32>
    %16 = vector.shape_cast %15 : vector<1x6x196xf32> to vector<6x196xf32>
    %17 = vector.shape_cast %14 : vector<6x196xf32> to vector<1x6x196xf32>
    tpu.vector_store %arg3[%c1_12, %c0_13, %c0_14], %17 {strides = array<i32>} : memref<2x6x196xf32, #tpu.memory_space<vmem>>, vector<1x6x196xf32>,
    return
  }
}

</mosaic_0001>

<bundles_post_ra>
// kernel: conv2d_pallas.1
= control target key start
LH: loop header
LB: loop body
LE: loop exit
PB: predicated region body
PF: predicated region fallthrough
CT: control target
= control target key end

     0   :  { %vm33_vm0 = vcmask 1042432   ;;  %v165_v3 = vmov 0   ;;  %vm29_vm1 = vcmask 220160   ;;  %vm81_vm2 = vcmask 553984   ;;  %s260_s0 = inlined_call_operand.vmem [shape: f32[2,27,196], index: 0, kind: input, shape index: {}]   ;;  %s261_s1 = inlined_call_operand.vmem [shape: f32[6,27], index: 1, kind: input, shape index: {}]   ;;  %s262_s2 = inlined_call_operand.vmem [shape: f32[6,1], index: 2, kind: input, shape index: {}]   ;;  %s263_s3 = inlined_call_operand.vmem [shape: f32[2,6,196], index: 3, kind: output, shape index: {}]  }
   0x1   :  { %v155_v0 = vld [vmem:[%s260_s0 + $0x70] sm:$0x7]  ;;  %v156_v1 = vld [vmem:[%s260_s0 + $0x78] sm:$0x7]  ;;  %v153_v2 = vld [vmem:[%s260_s0 + $0x60] sm:$0xff]  ;;  %164 = vset.pattern.permute.xlu0 %v165_v3 }
   0x2   :  { %157 = vmatpush.msk.msra.mxu2 %vm33_vm0, %v155_v0  ;;  %159 = vmatpush.msk.msra.mxu3 %vm33_vm0, %v156_v1  ;;  %v154_v4 = vld [vmem:[%s260_s0 + $0x68] sm:$0xff]  ;;  %v151_v5 = vld [vmem:[%s260_s0 + $0x50] sm:$0xff]  ;;  %v152_v6 = vld [vmem:[%s260_s0 + $0x58] sm:$0xff] }
   0x3   :  { %v22_v7 = vld [vmem:[%s260_s0 + $0x30] sm:$0x7]  ;;  %v23_v8 = vld [vmem:[%s260_s0 + $0x38] sm:$0x7]  ;;  %v20_v9 = vld [vmem:[%s260_s0 + $0x20] sm:$0xff] }
   0x4   :  { %111 = vmatpush.msra.mxu2 %v153_v2  ;;  %131 = vmatpush.msra.mxu3 %v154_v4  ;;  %v149_v10 = vld [vmem:[%s260_s0 + $0x40] sm:$0xff]  ;;  %v150_v11 = vld [vmem:[%s260_s0 + $0x48] sm:$0xff]  ;;  %v18_v14 = vld [vmem:[%s260_s0 + $0x10] sm:$0xff] }
   0x5   :  { %145 = vmatpush.msk.msra.mxu0 %vm33_vm0, %v22_v7  ;;  %147 = vmatpush.msk.msra.mxu1 %vm33_vm0, %v23_v8  ;;  %v21_v12 = vld [vmem:[%s260_s0 + $0x28] sm:$0xff]  ;;  %v14_v13 = vld [vmem:[%s261_s1] sm:$0x3f]  ;;  %v19_v15 = vld [vmem:[%s260_s0 + $0x18] sm:$0xff] }
   0x6   :  { %112 = vmatpush.msra.mxu2 %v151_v5  ;;  %132 = vmatpush.msra.mxu3 %v152_v6  ;;  %v15_v16 = vld [vmem:[%s262_s2] sm:$0x3f]  ;;  %v17_v18 = vld [vmem:[%s260_s0 + $0x8] sm:$0xff] }
   0x7   :  { %53 = vmatpush.msra.mxu0 %v20_v9  ;;  %73 = vmatpush.msra.mxu1 %v21_v12  ;;  %v16_v17 = vld [vmem:[%s260_s0] sm:$0xff] }
   0x8   :  { %113 = vmatpush.msra.mxu2 %v149_v10  ;;  %133 = vmatpush.msra.mxu3 %v150_v11 }
   0x9   :  { %158 = vmatmul.msk.f32.vlgmr.msra.gmra.mxu2 %vm29_vm1, %v14_v13  ;;  %160 = vmatmul.msk.f32.vlgmr.msra.gmra.mxu3 %vm29_vm1, %v14_v13 }
   0xa   :  { %54 = vmatpush.msra.mxu0 %v18_v14  ;;  %74 = vmatpush.msra.mxu1 %v19_v15 }
   0xb   :  { %26 = vperm.xlu0 %164, %v15_v16  }
   0xc   :  { %55 = vmatpush.msra.mxu0 %v16_v17  ;;  %75 = vmatpush.msra.mxu1 %v17_v18 }
   0xd   :  { %146 = vmatmul.msk.f32.vlgmr.msra.gmra.mxu0 %vm29_vm1, %v14_v13  ;;  %148 = vmatmul.msk.f32.vlgmr.msra.gmra.mxu1 %vm29_vm1, %v14_v13 }
  0x7d   :  { %v27_v19 = vpop.permute.xlu0 %26 }
  0x8a   :  { %v57_v20 = vpop.f32.mrf.mxu0  ;;  %v77_v21 = vpop.f32.mrf.mxu1 }
  0x8b   :  { %v58_v22 = vadd.f32 %v57_v20, %v27_v19  ;;  %v78_v23 = vadd.f32 %v77_v21, %v27_v19 }
  0x8c   :  { %v115_v24 = vpop.f32.mrf.mxu2  ;;  %v135_v25 = vpop.f32.mrf.mxu3 }
  0x8d   :  { %80 = vst [vmem:[%s263_s3] sm:$0x3f] %v58_v22  ;;  %v116_v26 = vadd.f32 %v115_v24, %v27_v19  ;;  %v136_v27 = vadd.f32 %v135_v25, %v27_v19 }
  0x8e   :  { %82 = vst.msk [vmem:[%s263_s3 + $0x8] sm:$0x3f] %vm81_vm2, %v78_v23 }
  0x8f   :  { %161 = vst [vmem:[%s263_s3 + $0x10] sm:$0x3f] %v116_v26 }
  0x90   :  { %162 = vst.msk [vmem:[%s263_s3 + $0x18] sm:$0x3f] %vm81_vm2, %v136_v27 }

</bundles_post_ra>
